<compile_context>
chip_gen: v6e
topology: v6e:2x2x1
jax: 0.10.0
libtpu: 0.0.40
codegen_flags: <defaults>
</compile_context>

<pallas_src>
import jax
import jax.numpy as jnp
from jax.experimental import pallas as pl
from jax.experimental.pallas import tpu as pltpu


def _round_up(x, m):
    return (x + m - 1) // m * m


def _discriminator_kernel(x_ref, w1_ref, b1_ref, w2_ref, b2_ref, w3_ref, b3_ref, o_ref):
    # x tile: (TILE_B, F) f32 -> bf16 for the MXU; accumulate in f32.
    x = x_ref[...].astype(jnp.bfloat16)

    # Linear 1 + LeakyReLU(0.2): bf16 operands, f32 accumulation, f32 epilogue.
    h = jnp.dot(x, w1_ref[...], preferred_element_type=jnp.float32) + b1_ref[...]
    h = jnp.where(h > 0, h, 0.2 * h)

    # Linear 2 + LeakyReLU(0.2)
    h = jnp.dot(h.astype(jnp.bfloat16), w2_ref[...],
                preferred_element_type=jnp.float32) + b2_ref[...]
    h = jnp.where(h > 0, h, 0.2 * h)

    # Head (out features = 1): lane-wise multiply + cross-lane reduce on VPU/XLU
    # instead of an N=1 MXU matmul; transpose to a lane-dense (1, TILE_B) row.
    w3_row = w3_ref[...].astype(jnp.float32)                    # (1, H2p)
    col = jnp.sum(h * w3_row, axis=-1, keepdims=True)           # (TILE_B, 1)
    logits = jnp.transpose(col) + b3_ref[0, 0]                  # (1, TILE_B)

    # Sigmoid: exp on EUP, approx reciprocal keeps the divide off the VALU path.
    o_ref[...] = pl.reciprocal(1.0 + jnp.exp(-logits), approx=True).astype(o_ref.dtype)


def discriminator_forward(x, params, *, tile_b=512):
    """x: (B, F) float32. params: w1 (F,H1), b1 (1,H1), w2 (H1,H2), b2 (1,H2),
    w3 (H2,1), b3 (1,1). Returns sigmoid scores of shape (B, 1) in float32."""
    B, F = x.shape
    w1, b1 = params["w1"], params["b1"]
    w2, b2 = params["w2"], params["b2"]
    w3, b3 = params["w3"], params["b3"]
    H1, H2 = w1.shape[1], w2.shape[1]

    # Hidden dims padded to lane-dense multiples of 128 (exact, see header).
    H1p, H2p = _round_up(H1, 128), _round_up(H2, 128)

    def pad2(a, r, c):
        return jnp.pad(a, ((0, r - a.shape[0]), (0, c - a.shape[1])))

    w1p = pad2(w1, F, H1p).astype(jnp.bfloat16)
    b1p = pad2(b1, 1, H1p).astype(jnp.float32)
    w2p = pad2(w2, H1p, H2p).astype(jnp.bfloat16)
    b2p = pad2(b2, 1, H2p).astype(jnp.float32)
    w3p = pad2(w3.reshape(H2, 1).T, 1, H2p).astype(jnp.bfloat16)   # (1, H2p) row
    b3p = b3.reshape(1, 1).astype(jnp.float32)

    # Batch tiling policy: multiples of 16; >=2 grid steps when B is large so
    # "parallel" can use both v7x TCs; 128-multiples keep the lane-dense out block
    # legal; pad waste bounded to <128 rows.
    tile_b = max(128, _round_up(min(int(tile_b), 1024), 128))
    if B <= 256:
        tb = _round_up(B, 16)                 # single grid step; block == full array
    else:
        n_steps = max(2, pl.cdiv(B, tile_b))
        tb = _round_up(pl.cdiv(B, n_steps), 128)
        while tb > 128 and _round_up(B, tb) - B >= 128:
            tb -= 128
    Bp = _round_up(B, tb)
    grid = (Bp // tb,)

    x_in = x.astype(jnp.float32)
    if Bp != B:                               # only pad the batch when needed
        x_in = jnp.pad(x_in, ((0, Bp - B), (0, 0)))

    def resident(shape):
        # Constant index map -> block stays resident in VMEM across all grid steps.
        # (On v7x one could additionally single-buffer these with
        #  pipeline_mode=pl.Buffered(1); trivial at these sizes, left at default.)
        return pl.BlockSpec(shape, lambda i: (0, 0))

    weight_bytes = (w1p.size + w2p.size + w3p.size) * 2 + (b1p.size + b2p.size) * 4
    vmem_need = (2 * tb * F * 4               # x double buffer (f32)
                 + 2 * weight_bytes           # resident weights (double-buffered)
                 + 2 * 2 * tb * 4             # out double buffer
                 + 4 * tb * (H1p + H2p) * 4)  # f32 intermediates headroom
    vmem_limit = int(min(64 << 20, max(32 << 20, vmem_need * 5 // 4)))

    cost = pl.CostEstimate(
        flops=2 * Bp * (F * H1p + H1p * H2p + H2p),
        transcendentals=Bp,
        bytes_accessed=Bp * F * 4 + weight_bytes + 8 + Bp * 4,
    )

    out = pl.pallas_call(
        _discriminator_kernel,
        out_shape=jax.ShapeDtypeStruct((1, Bp), jnp.float32),
        grid=grid,
        in_specs=[
            pl.BlockSpec((tb, F), lambda i: (i, 0)),             # x: tiled on batch
            resident((F, H1p)),                                   # weights / biases
            resident((1, H1p)),                                   # resident across steps
            resident((H1p, H2p)),
            resident((1, H2p)),
            resident((1, H2p)),
            pl.BlockSpec(memory_space=pltpu.MemorySpace.SMEM),    # b3 scalar in SMEM
        ],
        out_specs=pl.BlockSpec((1, tb), lambda i: (0, i)),        # lane-dense output
        compiler_params=pltpu.CompilerParams(
            dimension_semantics=("parallel",),
            vmem_limit_bytes=vmem_limit),
        cost_estimate=cost,
    )(x_in, w1p, b1p, w2p, b2p, w3p, b3p)
    return out[0, :B].reshape(B, 1)


def init_params(key, in_features, h1, h2):
    """Deterministic synthetic init (uniform ~ PyTorch default fan-in scaling)."""
    ks = jax.random.split(key, 6)

    def lin(kw, kb, fan_in, fan_out):
        bound = 1.0 / jnp.sqrt(float(fan_in))
        w = jax.random.uniform(kw, (fan_in, fan_out), jnp.float32, -bound, bound)
        b = jax.random.uniform(kb, (1, fan_out), jnp.float32, -bound, bound)
        return w, b

    w1, b1 = lin(ks[0], ks[1], in_features, h1)
    w2, b2 = lin(ks[2], ks[3], h1, h2)
    w3, b3 = lin(ks[4], ks[5], h2, 1)
    return {"w1": w1, "b1": b1, "w2": w2, "b2": b2, "w3": w3, "b3": b3}


def _reference(x, p):
    """Full-f32 reference (PyTorch-equivalent forward)."""
    def lrelu(v):
        return jnp.where(v > 0, v, 0.2 * v)
    h = lrelu(x @ p["w1"] + p["b1"])
    h = lrelu(h @ p["w2"] + p["b2"])
    return jax.nn.sigmoid(h @ p["w3"].reshape(-1, 1) + p["b3"].reshape(1, 1))


if __name__ == "__main__":
    # Small shapes: img_size=16 -> 256 input features, batch=8, hidden 128/64.
    B, IMG = 8, 16
    F_IN, H1, H2 = IMG * IMG, 128, 64

    key = jax.random.PRNGKey(0)
    kx, kp = jax.random.split(key)
    x = jax.random.normal(kx, (B, F_IN), jnp.float32)   # flattened images (B, img*img)
    params = init_params(kp, F_IN, H1, H2)

    out = jax.block_until_ready(discriminator_forward(x, params))

    ref = _reference(x, params)
    assert out.shape == (B, 1), out.shape
    # bf16 matmul operands + approx reciprocal -> loosened tolerance vs f32 reference.
    assert jnp.allclose(out, ref, atol=2e-2, rtol=2e-2), "mismatch vs reference"

    print("KERNEL_OK")
</pallas_src>

<mosaic_0001>
module attributes {stable_mosaic.version = 11 : i64} {
  func.func @_discriminator_kernel(%arg0: i32, %arg1: memref<16x256xf32, #tpu.memory_space<vmem>>, %arg2: memref<256x128xbf16, #tpu.memory_space<vmem>>, %arg3: memref<1x128xf32, #tpu.memory_space<vmem>>, %arg4: memref<128x128xbf16, #tpu.memory_space<vmem>>, %arg5: memref<1x128xf32, #tpu.memory_space<vmem>>, %arg6: memref<1x128xbf16, #tpu.memory_space<vmem>>, %arg7: memref<1x1xf32, #tpu.memory_space<smem>>, %arg8: memref<1x16xf32, #tpu.memory_space<vmem>>) attributes {dimension_semantics = [#tpu.dimension_semantics<parallel>], iteration_bounds = array<i64: 1>, scalar_prefetch = 0 : i64, scratch_operands = 0 : i64, tpu.core_type = #tpu.core_type<tc>, window_params = [{transform_indices = @transform_0, window_bounds = array<i64: 16, 256>}, {pipeline_mode = #tpu.pipeline_mode<synchronous>, transform_indices = @transform_1, window_bounds = array<i64: 256, 128>}, {pipeline_mode = #tpu.pipeline_mode<synchronous>, transform_indices = @transform_2, window_bounds = array<i64: 1, 128>}, {pipeline_mode = #tpu.pipeline_mode<synchronous>, transform_indices = @transform_3, window_bounds = array<i64: 128, 128>}, {pipeline_mode = #tpu.pipeline_mode<synchronous>, transform_indices = @transform_4, window_bounds = array<i64: 1, 128>}, {pipeline_mode = #tpu.pipeline_mode<synchronous>, transform_indices = @transform_5, window_bounds = array<i64: 1, 128>}, {transform_indices = @transform_6, window_bounds = array<i64: 1, 1>}, {transform_indices = @transform_7, window_bounds = array<i64: 1, 16>}]} {
    %c0 = arith.constant 0 : index
    %c0_0 = arith.constant 0 : index
    %0 = vector.load %arg1[%c0, %c0_0] : memref<16x256xf32, #tpu.memory_space<vmem>>, vector<16x256xf32>
    %1 = arith.truncf %0 : vector<16x256xf32> to vector<16x256xbf16>
    %c0_1 = arith.constant 0 : index
    %c0_2 = arith.constant 0 : index
    %2 = vector.load %arg2[%c0_1, %c0_2] : memref<256x128xbf16, #tpu.memory_space<vmem>>, vector<256x128xbf16>
    %cst = arith.constant dense<0.000000e+00> : vector<16x128xf32>
    %3 = tpu.matmul %1, %2, %cst {dimension_numbers = #tpu.dot_dimension_numbers<[1], [0], [0], [1], [0, 0, 1, 1], [], []>} : vector<16x256xbf16>, vector<256x128xbf16>, vector<16x128xf32> -> vector<16x128xf32>
    %c0_3 = arith.constant 0 : index
    %c0_4 = arith.constant 0 : index
    %4 = vector.load %arg3[%c0_3, %c0_4] : memref<1x128xf32, #tpu.memory_space<vmem>>, vector<1x128xf32>
    %5 = vector.broadcast %4 : vector<1x128xf32> to vector<16x128xf32>
    %6 = arith.addf %3, %5 : vector<16x128xf32>
    %cst_5 = arith.constant 0.000000e+00 : f32
    %7 = vector.broadcast %cst_5 : f32 to vector<16x128xf32>
    %8 = arith.cmpf ogt, %6, %7 : vector<16x128xf32>
    %cst_6 = arith.constant 2.000000e-01 : f32
    %9 = vector.broadcast %cst_6 : f32 to vector<16x128xf32>
    %10 = arith.mulf %9, %6 : vector<16x128xf32>
    %11 = arith.select %8, %6, %10 : vector<16x128xi1>, vector<16x128xf32>
    %12 = arith.truncf %11 : vector<16x128xf32> to vector<16x128xbf16>
    %c0_7 = arith.constant 0 : index
    %c0_8 = arith.constant 0 : index
    %13 = vector.load %arg4[%c0_7, %c0_8] : memref<128x128xbf16, #tpu.memory_space<vmem>>, vector<128x128xbf16>
    %cst_9 = arith.constant dense<0.000000e+00> : vector<16x128xf32>
    %14 = tpu.matmul %12, %13, %cst_9 {dimension_numbers = #tpu.dot_dimension_numbers<[1], [0], [0], [1], [0, 0, 1, 1], [], []>} : vector<16x128xbf16>, vector<128x128xbf16>, vector<16x128xf32> -> vector<16x128xf32>
    %c0_10 = arith.constant 0 : index
    %c0_11 = arith.constant 0 : index
    %15 = vector.load %arg5[%c0_10, %c0_11] : memref<1x128xf32, #tpu.memory_space<vmem>>, vector<1x128xf32>
    %16 = vector.broadcast %15 : vector<1x128xf32> to vector<16x128xf32>
    %17 = arith.addf %14, %16 : vector<16x128xf32>
    %cst_12 = arith.constant 0.000000e+00 : f32
    %18 = vector.broadcast %cst_12 : f32 to vector<16x128xf32>
    %19 = arith.cmpf ogt, %17, %18 : vector<16x128xf32>
    %cst_13 = arith.constant 2.000000e-01 : f32
    %20 = vector.broadcast %cst_13 : f32 to vector<16x128xf32>
    %21 = arith.mulf %20, %17 : vector<16x128xf32>
    %22 = arith.select %19, %17, %21 : vector<16x128xi1>, vector<16x128xf32>
    %c0_14 = arith.constant 0 : index
    %c0_15 = arith.constant 0 : index
    %23 = vector.load %arg6[%c0_14, %c0_15] : memref<1x128xbf16, #tpu.memory_space<vmem>>, vector<1x128xbf16>
    %24 = arith.extf %23 : vector<1x128xbf16> to vector<1x128xf32>
    %25 = vector.broadcast %24 : vector<1x128xf32> to vector<16x128xf32>
    %26 = arith.mulf %22, %25 : vector<16x128xf32>
    %cst_16 = arith.constant dense<0.000000e+00> : vector<16xf32>
    %27 = vector.multi_reduction <add>, %26, %cst_16 [1] : vector<16x128xf32> to vector<16xf32>
    %28 = vector.shape_cast %27 : vector<16xf32> to vector<16x1xf32>
    %29 = tpu.transpose %28, [1, 0] : vector<16x1xf32> -> vector<1x16xf32>
    %c0_17 = arith.constant 0 : index
    %c0_18 = arith.constant 0 : index
    %30 = memref.load %arg7[%c0_17, %c0_18] : memref<1x1xf32, #tpu.memory_space<smem>>
    %31 = vector.broadcast %30 : f32 to vector<1x16xf32>
    %32 = arith.addf %29, %31 : vector<1x16xf32>
    %cst_19 = arith.constant 0.000000e+00 : f32
    %33 = vector.broadcast %cst_19 : f32 to vector<1x16xf32>
    %34 = arith.subf %33, %32 : vector<1x16xf32>
    %35 = math.exp %34 : vector<1x16xf32>
    %cst_20 = arith.constant 1.000000e+00 : f32
    %36 = vector.broadcast %cst_20 : f32 to vector<1x16xf32>
    %37 = arith.addf %36, %35 : vector<1x16xf32>
    %38 = tpu.reciprocal %37 {approx = true} : vector<1x16xf32> -> vector<1x16xf32>
    %c0_21 = arith.constant 0 : index
    %c0_22 = arith.constant 0 : index
    %39 = vector.load %arg8[%c0_21, %c0_22] : memref<1x16xf32, #tpu.memory_space<vmem>>, vector<1x16xf32>
    tpu.vector_store %arg8[%c0_21, %c0_22], %38 {strides = array<i32>} : memref<1x16xf32, #tpu.memory_space<vmem>>, vector<1x16xf32>,
    return
  }
  func.func @transform_0(%arg0: i32) -> (i32, i32) {
    %c0_i32 = arith.constant 0 : i32
    %c0_i32_0 = arith.constant 0 : i32
    return %arg0, %c0_i32 : i32, i32
  }
  func.func @transform_1(%arg0: i32) -> (i32, i32) {
    %c0_i32 = arith.constant 0 : i32
    %c0_i32_0 = arith.constant 0 : i32
    %c0_i32_1 = arith.constant 0 : i32
    return %c0_i32, %c0_i32_0 : i32, i32
  }
  func.func @transform_2(%arg0: i32) -> (i32, i32) {
    %c0_i32 = arith.constant 0 : i32
    %c0_i32_0 = arith.constant 0 : i32
    %c0_i32_1 = arith.constant 0 : i32
    return %c0_i32, %c0_i32_0 : i32, i32
  }
  func.func @transform_3(%arg0: i32) -> (i32, i32) {
    %c0_i32 = arith.constant 0 : i32
    %c0_i32_0 = arith.constant 0 : i32
    %c0_i32_1 = arith.constant 0 : i32
    return %c0_i32, %c0_i32_0 : i32, i32
  }
  func.func @transform_4(%arg0: i32) -> (i32, i32) {
    %c0_i32 = arith.constant 0 : i32
    %c0_i32_0 = arith.constant 0 : i32
    %c0_i32_1 = arith.constant 0 : i32
    return %c0_i32, %c0_i32_0 : i32, i32
  }
  func.func @transform_5(%arg0: i32) -> (i32, i32) {
    %c0_i32 = arith.constant 0 : i32
    %c0_i32_0 = arith.constant 0 : i32
    %c0_i32_1 = arith.constant 0 : i32
    return %c0_i32, %c0_i32_0 : i32, i32
  }
  func.func @transform_6(%arg0: i32) -> (i32, i32) {
    %c0_i32 = arith.constant 0 : i32
    %c0_i32_0 = arith.constant 0 : i32
    %c0_i32_1 = arith.constant 0 : i32
    return %c0_i32, %c0_i32_0 : i32, i32
  }
  func.func @transform_7(%arg0: i32) -> (i32, i32) {
    %c0_i32 = arith.constant 0 : i32
    %c0_i32_0 = arith.constant 0 : i32
    return %c0_i32, %arg0 : i32, i32
  }
}

</mosaic_0001>

<bundles_post_ra>
// kernel: tpu_custom_call.1
= control target key start
LH: loop header
LB: loop body
LE: loop exit
PB: predicated region body
PF: predicated region fallthrough
CT: control target
= control target key end

     0   :  { %13 = vsyncpa [#allocation4], 0  ;;  %s731_s0 = inlined_call_operand.hbm [shape: f32[16,256], index: 0, kind: input, shape index: {}]   ;;  %s732_s1 = inlined_call_operand.hbm [shape: bf16[256,128], index: 1, kind: input, shape index: {}]   ;;  %s733_s2 = inlined_call_operand.vmem [shape: f32[1,128], index: 2, kind: input, shape index: {}]   ;;  %s734_s3 = inlined_call_operand.hbm [shape: bf16[128,128], index: 3, kind: input, shape index: {}]   ;;  %s735_s4 = inlined_call_operand.vmem [shape: f32[1,128], index: 4, kind: input, shape index: {}]   ;;  %s736_s5 = inlined_call_operand.vmem [shape: bf16[1,128], index: 5, kind: input, shape index: {}]   ;;  %s737_s6 = inlined_call_operand.<no memory space> [shape: f32[1,1], index: 6, kind: input, shape index: {}]   ;;  %s738_s7 = inlined_call_operand.hbm [shape: f32[1,16], index: 7, kind: output, shape index: {}]  }
   0x1   :  { %14 = vsyncpa [#allocation7], 0 }
   0x2   :  { %15 = vsyncpa [#allocation5], 0  ;;  %s648_s24 = smov [#allocation6]  }
   0x3   :  { %s33_s25 = sshll.u32 %s648_s24, 4  ;;  %s34_s25 = int_to_ptr.vmem [resolvable:$true] %s33_s25 }
   0x4   :  { %s570_s26 = scalar_lea.vmem %s34_s25, 2048  ;;  %p575_p1 = scmp.lt.s32.totalorder %s34_s25, %s34_s25 }
   0x5   :  { %p571_p0 = scmp.ne.s32.totalorder %s34_s25, %s570_s26  ;;  %p576_p2 = scmp.lt.s32.totalorder %s570_s26, %s570_s26 }
   0x7   :  { %p577_p3 = por %p576_p2, %p575_p1 }
   0x9   :  { %p578_p4 = pnand %p577_p3, %p571_p0 }
   0xb   :  { %581 = shalt.err (!%p578_p4)
}
   0xc   :  { %s649_s27 = smov 64   ;;  %s650_s28 = smov 4  }
   0xd   :  { %39 = dma.hbm_to_vmem [thread:$0]  %s732_s1, 2048, %s34_s25, [#allocation7], %s649_s27, %s649_s27, %s650_s28  }
   0xe   :  { %s651_s8 = smov [#allocation3]  }
   0xf   :  { %s21_s9 = sshll.u32 %s651_s8, 4  ;;  %s22_s9 = int_to_ptr.vmem [resolvable:$true] %s21_s9 }
  0x10   :  { %s590_s10 = scalar_lea.vmem %s22_s9, 512  ;;  %p595_p6 = scmp.lt.s32.totalorder %s22_s9, %s22_s9 }
  0x11   :  { %p591_p5 = scmp.ne.s32.totalorder %s22_s9, %s590_s10  ;;  %p596_p7 = scmp.lt.s32.totalorder %s590_s10, %s590_s10 }
  0x13   :  { %p597_p8 = por %p596_p7, %p595_p6 }
  0x15   :  { %p598_p9 = pnand %p597_p8, %p591_p5 }
  0x17   :  { %601 = shalt.err (!%p598_p9)
}
  0x18   :  { %s652_s11 = smov 256   ;;  %s653_s12 = smov 16  }
  0x19   :  { %27 = dma.hbm_to_vmem [thread:$0]  %s731_s0, 512, %s22_s9, [#allocation4], %s652_s11, %s652_s11, %s653_s12  }
  0x1a   :  { %s654_s15 = smov [#allocation8]  }
  0x1b   :  { %s47_s16 = sshll.u32 %s654_s15, 4  ;;  %s48_s16 = int_to_ptr.vmem [resolvable:$true] %s47_s16 }
  0x1c   :  { %s610_s1 = scalar_lea.vmem %s48_s16, 1024  ;;  %p615_p11 = scmp.lt.s32.totalorder %s48_s16, %s48_s16 }
  0x1d   :  { %p611_p10 = scmp.ne.s32.totalorder %s48_s16, %s610_s1  ;;  %p616_p12 = scmp.lt.s32.totalorder %s610_s1, %s610_s1 }
  0x1f   :  { %p617_p13 = por %p616_p12, %p615_p11 }
  0x21   :  { %p618_p0 = pnand %p617_p13, %p611_p10 }
  0x23   :  { %621 = shalt.err (!%p618_p0)
}
  0x24   :  { %53 = dma.hbm_to_vmem [thread:$0]  %s734_s3, 1024, %s48_s16, [#allocation7], %s649_s27, %s649_s27, %s650_s28  }
  0x25   :  { %642 = dma.done.wait [#allocation4], 512  }
  0x26   :  { %643 = vsyncadd [#allocation4], 4294966784 }
  0x27   :  { %644 = dma.done.wait [#allocation7], 3072  }
  0x28   :  { %645 = vsyncadd [#allocation7], 4294964224  ;;  %v655_v0 = vmov 0.0   ;;  %v534_v1 = vld [vmem:[#allocation6 + $0x78] sm:$0xff]   ;;  %v536_v3 = vld [vmem:[#allocation6 + $0x70] sm:$0xff]   ;;  %vm656_vm0 = vmmov 0   ;;  %v379_v45 = vlaneseq }
  0x29   :  { %504 = vmatprep.subr.bf16.mxu1 %v655_v0  ;;  %v535_v2 = vld [vmem:[#allocation6 + $0x38] sm:$0xff]   ;;  %473 = vmatprep.subr.bf16.mxu0 %v534_v1  ;;  %v537_v4 = vld [vmem:[#allocation6 + $0x30] sm:$0xff]   ;;  %v538_v5 = vld [vmem:[#allocation6 + $0x68] sm:$0xff]   ;;  %s657_s22 = smov [#allocation9]   ;;  %vm429_vm5 = vcmask 122880  }
  0x2a   :  { %474 = vmatpush3.bf16.msra.mxu0 %v535_v2  ;;  %v539_v6 = vld [vmem:[#allocation6 + $0x28] sm:$0xff]   ;;  %v540_v7 = vld [vmem:[#allocation6 + $0x60] sm:$0xff]   ;;  %v542_v9 = vld [vmem:[#allocation6 + $0x58] sm:$0xff]   ;;  %520 = vmatprep.mubr.msk.bf16.mxu1 %vm656_vm0, %v655_v0  ;;  %v380_v46 = vshrl.u32 %v379_v45, 7  ;;  %v422_v2 = vstv %s737_s6  ;;  %s437_s23 = sshll.u32 %s657_s22, 4  ;;  %s438_s23 = int_to_ptr.vmem [resolvable:$true] %s437_s23 }
  0x2b   :  { %475 = vmatprep.subr.bf16.mxu0 %v536_v3  ;;  %v541_v8 = vld [vmem:[#allocation6 + $0x20] sm:$0xff]   ;;  %v543_v10 = vld [vmem:[#allocation6 + $0x18] sm:$0xff]   ;;  %v544_v11 = vld [vmem:[#allocation6 + $0x50] sm:$0xff]   ;;  %s622_s24 = scalar_lea.vmem %s438_s23, 16  ;;  %s626_s25 = scalar_lea.vmem %s438_s23, 32 }
  0x2c   :  { %v71_v12 = vld [vmem:[#allocation3 + $0x8] sm:$0xff]  ;;  %v73_v13 = vld [vmem:[#allocation3 + $0x18] sm:$0xff]  ;;  %v545_v14 = vld [vmem:[#allocation6 + $0x10] sm:$0xff]   ;;  %v381_v50 = vsub.s32 0, %v380_v46  ;;  %p623_p1 = scmp.ne.s32.totalorder %s438_s23, %s622_s24  ;;  %p627_p2 = scmp.lt.s32.totalorder %s438_s23, %s438_s23 }
  0x2d   :  { %v75_v15 = vpack.c.bf16 %v73_v13, %v71_v12  ;;  %v550_v16 = vld [vmem:[#allocation8 + $0x38] sm:$0xff]   ;;  %v546_v17 = vld [vmem:[#allocation6 + $0x48] sm:$0xff]   ;;  %v551_v18 = vld [vmem:[#allocation8 + $0x30] sm:$0xff]   ;;  %p628_p3 = scmp.lt.s32.totalorder %s626_s25, %s622_s24 }
  0x2e   :  { %476 = vmatpush3.bf16.msra.mxu0 %v537_v4  ;;  %505 = vmatpush3.bf16.msra.mxu1 %v550_v16  ;;  %v547_v19 = vld [vmem:[#allocation6 + $0x8] sm:$0xff]   ;;  %v548_v20 = vld [vmem:[#allocation6 + $0x40] sm:$0xff]   ;;  %v72_v24 = vld [vmem:[#allocation3 + $0x10] sm:$0xff] }
  0x2f   :  { %477 = vmatprep.subr.bf16.mxu0 %v538_v5  ;;  %243 = vmatprep.mubr.bf16.mxu0 %v75_v15  ;;  %v552_v21 = vld [vmem:[#allocation8 + $0x28] sm:$0xff]   ;;  %v549_v22 = vld [vmem:[#allocation6] sm:$0xff]   ;;  %v554_v27 = vld [vmem:[#allocation8 + $0x18] sm:$0xff]   ;;  %p629_p4 = por %p628_p3, %p627_p2 }
  0x30   :  { %506 = vmatprep.subr.bf16.mxu1 %v655_v0  ;;  %v70_v23 = vld [vmem:[#allocation3] sm:$0xff]  ;;  %v555_v28 = vld [vmem:[#allocation8 + $0x10] sm:$0xff]   ;;  %v556_v29 = vld [vmem:[#allocation8 + $0x8] sm:$0xff]  }
  0x31   :  { %v553_v25 = vld [vmem:[#allocation8 + $0x20] sm:$0xff]   ;;  %v74_v26 = vpack.c.bf16 %v72_v24, %v70_v23  ;;  %p630_p5 = pnand %p629_p4, %p623_p1 }
  0x32   :  { %478 = vmatpush3.bf16.msra.mxu0 %v539_v6  ;;  %507 = vmatpush3.bf16.msra.mxu1 %v551_v18  ;;  %v557_v30 = vld [vmem:[#allocation8] sm:$0xff]  }
  0x33   :  { %479 = vmatprep.subr.bf16.mxu0 %v540_v7  ;;  %508 = vmatprep.subr.bf16.mxu1 %v655_v0  ;;  %v447_v32 = vld [vmem:[%s733_s2] ss:$0 sm:$0xff] }
  0x34   :  { %v377_v47 = vld [vmem:[%s736_s5] sm:$0x1] }
  0x35   :  { %v464_v48 = vld [vmem:[%s735_s4] ss:$0 sm:$0xff]  ;;  %v378_v49 = vunpack.c.l.bf16 %v377_v47 }
  0x36   :  { %480 = vmatpush3.bf16.msra.mxu0 %v541_v8  ;;  %509 = vmatpush3.bf16.msra.mxu1 %v552_v21 }
  0x37   :  { %481 = vmatprep.subr.bf16.mxu0 %v542_v9  ;;  %510 = vmatprep.subr.bf16.mxu1 %v655_v0  ;;  %v382_v54 = vrot.slane %v378_v49, %v381_v50 }
  0x3a   :  { %482 = vmatpush3.bf16.msra.mxu0 %v543_v10  ;;  %511 = vmatpush3.bf16.msra.mxu1 %v553_v25 }
  0x3b   :  { %483 = vmatprep.subr.bf16.mxu0 %v544_v11  ;;  %512 = vmatprep.subr.bf16.mxu1 %v655_v0 }
  0x3e   :  { %484 = vmatpush3.bf16.msra.mxu0 %v545_v14  ;;  %513 = vmatpush3.bf16.msra.mxu1 %v554_v27 }
  0x3f   :  { %485 = vmatprep.subr.bf16.mxu0 %v546_v17  ;;  %514 = vmatprep.subr.bf16.mxu1 %v655_v0 }
  0x42   :  { %486 = vmatpush3.bf16.msra.mxu0 %v547_v19  ;;  %515 = vmatpush3.bf16.msra.mxu1 %v555_v28 }
  0x43   :  { %487 = vmatprep.subr.bf16.mxu0 %v548_v20  ;;  %516 = vmatprep.subr.bf16.mxu1 %v655_v0 }
  0x46   :  { %488 = vmatpush3.bf16.msra.mxu0 %v549_v22  ;;  %517 = vmatpush3.bf16.msra.mxu1 %v556_v29 }
  0x47   :  { %518 = vmatprep.subr.bf16.mxu1 %v655_v0 }
  0x49   :  { %244 = vmatmul.mubr.bf16.vlgmr.msra.gmra.mxu0 %v74_v26 }
  0x4a   :  { %519 = vmatpush3.bf16.msra.mxu1 %v557_v30 }
 0x109   :  { %v489_v31 = vpop.f32.mrf.mxu0 }
 0x10b   :  { %v490_v33 = vpop.f32.mrf.mxu0 }
 0x10c   :  { %v491_v34 = vadd.f32 %v490_v33, %v489_v31 }
 0x10d   :  { %v492_v35 = vpop.f32.mrf.mxu0 }
 0x10e   :  { %v246_v36 = vadd.f32 %v491_v34, %v447_v32 }
 0x10f   :  { %v493_v37 = vpop.f32.mrf.mxu0 }
 0x110   :  { %v494_v38 = vadd.f32 %v493_v37, %v492_v35  ;;  %v254_v39 = vmul.f32 0.2, %v246_v36  ;;  %vm252_vm1 = vcmp.gt.f32.partialorder %v246_v36, 0.0 }
 0x112   :  { %v249_v40 = vadd.f32 %v494_v38, %v447_v32  ;;  %v256_v42 = vsel %vm252_vm1, %v246_v36, %v254_v39 }
 0x114   :  { %vm253_vm2 = vcmp.gt.f32.partialorder %v249_v40, 0.0  ;;  %v255_v41 = vmul.f32 0.2, %v249_v40 }
 0x116   :  { %v257_v43 = vsel %vm253_vm2, %v249_v40, %v255_v41 }
 0x117   :  { %v258_v44 = vpack.c.bf16 %v257_v43, %v256_v42 }
 0x119   :  { %521 = vmatmul.mubr.bf16.vlgmr.msra.gmra.mxu1 %v258_v44 }
 0x1d9   :  { %v364_v51 = vpop.f32.mrf.mxu1 }
 0x1da   :  { %v365_v52 = vadd.f32 %v464_v48, %v364_v51 }
 0x1db   :  { %v522_v53 = vpop.f32.mrf.mxu1 }
 0x1dc   :  { %v373_v55 = vmul.f32 0.2, %v365_v52  ;;  %vm371_vm3 = vcmp.gt.f32.partialorder %v365_v52, 0.0 }
 0x1dd   :  { %v367_v56 = vpop.f32.mrf.mxu1 }
 0x1de   :  { %v368_v57 = vadd.f32 %v464_v48, %v367_v56  ;;  %v375_v58 = vsel %vm371_vm3, %v365_v52, %v373_v55 }
 0x1df   :  { %v523_v59 = vpop.f32.mrf.mxu1  ;;  %v383_v60 = vmul.f32 %v382_v54, %v375_v58 }
 0x1e0   :  { %v374_v61 = vmul.f32 0.2, %v368_v57  ;;  %vm372_vm4 = vcmp.gt.f32.partialorder %v368_v57, 0.0 }
 0x1e1   :  { %385 = vadd.xlane.f32.xlu0 %v383_v60 }
 0x1e2   :  { %v376_v62 = vsel %vm372_vm4, %v368_v57, %v374_v61 }
 0x1e3   :  { %v384_v63 = vmul.f32 %v382_v54, %v376_v62 }
 0x1e5   :  { %387 = vadd.xlane.f32.xlu0 %v384_v63 }
 0x26a   :  { %v386_v0 = vpop.xlane.xlu0 %385 }
 0x26b   :  { %389 = vxpose.xlu1.b32.start [1/2] (short) (narrow) %v386_v0, 8 }
 0x26e   :  { %v388_v1 = vpop.xlane.xlu0 %387 }
 0x26f   :  { %390 = vxpose.xlu1.b32.end [2/2] (short) (narrow) %v388_v1, 8 }
 0x2e7   :  { %v405_v3 = vpop.trf.xlu1 }
 0x2e8   :  { %v423_v4 = vadd.f32 %v422_v2, %v405_v3 }
 0x2ea   :  { %v424_v5 = vsub.f32 0.0, %v423_v4 }
 0x2ec   :  { %v425_v6 = vmul.f32 1.442695, %v424_v5 }
 0x2ee   :  { %558 = vpow2.f32 %v425_v6 }
 0x2fb   :  { %v559_v7 = vpop.eup %558 }
 0x2fc   :  { %v427_v8 = vadd.f32 1.0, %v559_v7 }
 0x2fe   :  { %560 = vrcp.f32 %v427_v8 }
 0x30b   :  { %v561_v9 = vpop.eup %560 }
 0x30c   :  { %430 = vst.msk [vmem:[#allocation9] sm:$0x1] %vm429_vm5, %v561_v9 }
 0x30d   :  { %633 = shalt.err (!%p630_p5)
}
 0x30e   :  { %440 = dma.vmem_to_hbm [thread:$0]  %s438_s23, 16, %s738_s7, [#allocation5]  }
 0x30f   :  { %646 = dma.done.wait [#allocation5], 16  }
 0x310   :  { %647 = vsyncadd [#allocation5], 4294967280 }
 0x311   :  { %444 = vsyncpa [#allocation4], 1 }
 0x312   :  { %445 = vsyncpa [#allocation7], 1 }
 0x313   :  { %446 = vsyncpa [#allocation5], 1 }

</bundles_post_ra>
